<compile_context>
chip_gen: v7x
topology: tpu7x:2x2x1
jax: 0.10.0
libtpu: 0.0.40
codegen_flags: <defaults>
</compile_context>

<pallas_src>
import functools

import jax
import jax.numpy as jnp
from jax.experimental import pallas as pl
from jax.experimental.pallas import tpu as pltpu

_EPS = 1e-5


def _group_mean(v, inv_c, groups):
    """Channel mean of a (rows, T) block.

    groups == 1: plain sublane reduction -> (1, T), broadcasts over all rows.
    groups  > 1: rows = C*groups with row r = c*groups + g; the mean over the C
    rows of each spatial group g is produced *already broadcast* to every row of
    that group via a log2(C)-step sublane-roll tree (XLU).  The wrapper guarantees
    C = rows // groups is a power of two in this path.
    """
    rows = v.shape[0]
    if groups == 1:
        return jnp.sum(v, axis=0, keepdims=True) * inv_c
    acc = v
    shift = groups
    while shift < rows:                      # static Python loop: log2(C) steps
        acc = acc + pltpu.roll(acc, shift=shift, axis=0)
        shift *= 2
    return acc * inv_c


def _ln_withbias_kernel(x_ref, w_ref, b_ref, o_ref, *, inv_c, groups):
    x = x_ref[...].astype(jnp.float32)               # (rows, T): rows on sublanes
    mu = _group_mean(x, inv_c, groups)
    xc = x - mu
    var = _group_mean(xc * xc, inv_c, groups)        # centered (unbiased=False) variance
    inv_std = jax.lax.rsqrt(var + _EPS)
    y = xc * inv_std * w_ref[...] + b_ref[...]       # w/b are (rows, 1) f32, resident
    o_ref[...] = y.astype(o_ref.dtype)


def _ln_biasfree_kernel(x_ref, w_ref, o_ref, *, inv_c, groups):
    x = x_ref[...].astype(jnp.float32)               # (rows, T)
    mu = _group_mean(x, inv_c, groups)
    xc = x - mu
    var = _group_mean(xc * xc, inv_c, groups)
    y = x * jax.lax.rsqrt(var + _EPS) * w_ref[...]   # NOTE: uncentered numerator (bias-free)
    o_ref[...] = y.astype(o_ref.dtype)


def _pick_tile_hw(hw, rows, elem_bytes, target_bytes, batch, min_total_steps=4):
    """Pick the lane-tile width: a multiple of 128 sized to ~target_bytes per block,
    preferring a width that divides hw (no ragged last step) and keeping at least
    `min_total_steps` total grid steps so both v7x TensorCores stay fed and the
    double-buffer pipeline can overlap DMA with compute."""
    row_bytes = rows * elem_bytes
    max_lanes = max(128, (target_bytes // row_bytes) // 128 * 128)
    need_tiles = -(-min_total_steps // max(batch, 1))          # ceil division
    if need_tiles > 1 and hw >= need_tiles * 128:
        max_lanes = min(max_lanes, max(128, (hw // need_tiles) // 128 * 128))
    if hw <= max_lanes:
        return hw                       # whole spatial row in one lane-dense tile
    t = max_lanes
    while t >= 128 and t * 2 >= max_lanes:      # search down to max_lanes/2 for a divisor
        if hw % t == 0:
            return t
        t -= 128
    return max_lanes


def layernorm_nchw(x, weight, bias=None, layer_norm_type="WithBias",
                   target_block_bytes=4 << 20):
    """x: (B, C, H, W); weight/bias: (C,).  Returns (B, C, H, W)."""
    b, c, h, w = x.shape
    hw = h * w

    # Small-C sublane fold: (B, C, HW) -> (B, C*G, HW/G), row r = c*G + g.
    # Free contiguous reshape; only used when C in {1,2,4} and HW divides evenly.
    groups = 1
    if c < 8 and 8 % c == 0 and hw % (8 // c) == 0:
        groups = 8 // c
    rows = c * groups
    hw_eff = hw // groups
    x3d = x.reshape(b, rows, hw_eff)

    elem_bytes = max(jnp.dtype(x.dtype).itemsize, 4)   # f32 in-kernel working set
    tile = _pick_tile_hw(hw_eff, rows, elem_bytes, target_block_bytes, b)
    grid = (b, pl.cdiv(hw_eff, tile))

    # Parameters: one row per folded sublane row (channel = row // groups).
    w_rows = jnp.repeat(weight.astype(jnp.float32), groups).reshape(rows, 1)
    if layer_norm_type == "BiasFree":
        kernel = functools.partial(_ln_biasfree_kernel, inv_c=1.0 / c, groups=groups)
        params = (w_rows,)
    else:
        kernel = functools.partial(_ln_withbias_kernel, inv_c=1.0 / c, groups=groups)
        b_rows = jnp.repeat(bias.astype(jnp.float32), groups).reshape(rows, 1)
        params = (w_rows, b_rows)

    data_spec = pl.BlockSpec((None, rows, tile), lambda bi, j: (bi, 0, j))
    param_spec = pl.BlockSpec((rows, 1), lambda bi, j: (0, 0))

    y3d = pl.pallas_call(
        kernel,
        out_shape=jax.ShapeDtypeStruct((b, rows, hw_eff), x.dtype),
        grid_spec=pltpu.PrefetchScalarGridSpec(
            num_scalar_prefetch=0,
            grid=grid,
            in_specs=[data_spec] + [param_spec] * len(params),
            out_specs=pl.BlockSpec((None, rows, tile), lambda bi, j: (bi, 0, j)),
        ),
        compiler_params=pltpu.CompilerParams(
            dimension_semantics=("parallel", "parallel"),
            vmem_limit_bytes=48 * 1024 * 1024,
        ),
    )(x3d, *params)

    return y3d.reshape(b, c, h, w)


def _reference_nchw(x, weight, bias=None, layer_norm_type="WithBias"):
    # Pure-JAX reference matching the PyTorch module.
    xt = jnp.transpose(x, (0, 2, 3, 1)).astype(jnp.float32)   # (B,H,W,C)
    mu = jnp.mean(xt, axis=-1, keepdims=True)
    var = jnp.mean((xt - mu) ** 2, axis=-1, keepdims=True)
    if layer_norm_type == "BiasFree":
        y = xt / jnp.sqrt(var + _EPS) * weight
    else:
        y = (xt - mu) / jnp.sqrt(var + _EPS) * weight + bias
    return jnp.transpose(y, (0, 3, 1, 2)).astype(x.dtype)


if __name__ == "__main__":
    key = jax.random.PRNGKey(0)

    # Primary case: matches the module's to_3d/to_4d usage with a small C=4 feature map.
    B, C, H, W = 2, 4, 16, 16
    x = jax.random.normal(key, (B, C, H, W), dtype=jnp.float32)
    weight = jnp.ones((C,), dtype=jnp.float32) + 0.1 * jnp.arange(C, dtype=jnp.float32)
    bias = 0.05 * jnp.arange(C, dtype=jnp.float32)

    out_wb = layernorm_nchw(x, weight, bias, layer_norm_type="WithBias")
    out_bf = layernorm_nchw(x, weight, None, layer_norm_type="BiasFree")
    jax.block_until_ready(out_wb)
    jax.block_until_ready(out_bf)

    ref_wb = _reference_nchw(x, weight, bias, "WithBias")
    ref_bf = _reference_nchw(x, weight, None, "BiasFree")
    assert out_wb.shape == (B, C, H, W)
    assert out_bf.shape == (B, C, H, W)
    assert jnp.allclose(out_wb, ref_wb, atol=1e-5, rtol=1e-5)
    assert jnp.allclose(out_bf, ref_bf, atol=1e-5, rtol=1e-5)

    # Secondary case: larger channel count (no sublane fold path), Restormer-like dim.
    key2 = jax.random.PRNGKey(1)
    C2 = 48
    x2 = jax.random.normal(key2, (1, C2, 8, 8), dtype=jnp.float32)
    w2 = jnp.ones((C2,), dtype=jnp.float32) + 0.01 * jnp.arange(C2, dtype=jnp.float32)
    b2 = 0.02 * jnp.arange(C2, dtype=jnp.float32)
    out2 = layernorm_nchw(x2, w2, b2, layer_norm_type="WithBias")
    jax.block_until_ready(out2)
    assert jnp.allclose(out2, _reference_nchw(x2, w2, b2, "WithBias"), atol=1e-5, rtol=1e-5)

    print("KERNEL_OK")
</pallas_src>

<mosaic_0001>
module attributes {stable_mosaic.version = 11 : i64} {
  func.func @_ln_withbias_kernel(%arg0: i32, %arg1: i32, %arg2: memref<1x8x128xf32, #tpu.memory_space<vmem>>, %arg3: memref<8x1xf32, #tpu.memory_space<vmem>>, %arg4: memref<8x1xf32, #tpu.memory_space<vmem>>, %arg5: memref<1x8x128xf32, #tpu.memory_space<vmem>>) attributes {dimension_semantics = [#tpu.dimension_semantics<parallel>, #tpu.dimension_semantics<parallel>], iteration_bounds = array<i64: 2, 1>, scalar_prefetch = 0 : i64, scratch_operands = 0 : i64, tpu.core_type = #tpu.core_type<tc>, window_params = [{transform_indices = @transform_0, window_bounds = array<i64: 1, 8, 128>}, {pipeline_mode = #tpu.pipeline_mode<synchronous>, transform_indices = @transform_1, window_bounds = array<i64: 8, 1>}, {pipeline_mode = #tpu.pipeline_mode<synchronous>, transform_indices = @transform_2, window_bounds = array<i64: 8, 1>}, {transform_indices = @transform_3, window_bounds = array<i64: 1, 8, 128>}]} {
    %c0 = arith.constant 0 : index
    %c0_0 = arith.constant 0 : index
    %c0_1 = arith.constant 0 : index
    %0 = vector.load %arg2[%c0, %c0_0, %c0_1] : memref<1x8x128xf32, #tpu.memory_space<vmem>>, vector<1x8x128xf32>
    %1 = vector.shape_cast %0 : vector<1x8x128xf32> to vector<8x128xf32>
    %c2_i32 = arith.constant 2 : i32
    %2 = tpu.dynamic_rotate %1 by %c2_i32 dim 0 : vector<8x128xf32>, i32 -> vector<8x128xf32>
    %3 = arith.addf %1, %2 : vector<8x128xf32>
    %c4_i32 = arith.constant 4 : i32
    %4 = tpu.dynamic_rotate %3 by %c4_i32 dim 0 : vector<8x128xf32>, i32 -> vector<8x128xf32>
    %5 = arith.addf %3, %4 : vector<8x128xf32>
    %cst = arith.constant 2.500000e-01 : f32
    %6 = vector.broadcast %cst : f32 to vector<8x128xf32>
    %7 = arith.mulf %5, %6 : vector<8x128xf32>
    %8 = arith.subf %1, %7 : vector<8x128xf32>
    %9 = arith.mulf %8, %8 : vector<8x128xf32>
    %c2_i32_2 = arith.constant 2 : i32
    %10 = tpu.dynamic_rotate %9 by %c2_i32_2 dim 0 : vector<8x128xf32>, i32 -> vector<8x128xf32>
    %11 = arith.addf %9, %10 : vector<8x128xf32>
    %c4_i32_3 = arith.constant 4 : i32
    %12 = tpu.dynamic_rotate %11 by %c4_i32_3 dim 0 : vector<8x128xf32>, i32 -> vector<8x128xf32>
    %13 = arith.addf %11, %12 : vector<8x128xf32>
    %cst_4 = arith.constant 2.500000e-01 : f32
    %14 = vector.broadcast %cst_4 : f32 to vector<8x128xf32>
    %15 = arith.mulf %13, %14 : vector<8x128xf32>
    %cst_5 = arith.constant 9.99999974E-6 : f32
    %16 = vector.broadcast %cst_5 : f32 to vector<8x128xf32>
    %17 = arith.addf %15, %16 : vector<8x128xf32>
    %18 = math.rsqrt %17 : vector<8x128xf32>
    %19 = arith.mulf %8, %18 : vector<8x128xf32>
    %c0_6 = arith.constant 0 : index
    %c0_7 = arith.constant 0 : index
    %20 = vector.load %arg3[%c0_6, %c0_7] : memref<8x1xf32, #tpu.memory_space<vmem>>, vector<8x1xf32>
    %21 = vector.broadcast %20 : vector<8x1xf32> to vector<8x128xf32>
    %22 = arith.mulf %19, %21 : vector<8x128xf32>
    %c0_8 = arith.constant 0 : index
    %c0_9 = arith.constant 0 : index
    %23 = vector.load %arg4[%c0_8, %c0_9] : memref<8x1xf32, #tpu.memory_space<vmem>>, vector<8x1xf32>
    %24 = vector.broadcast %23 : vector<8x1xf32> to vector<8x128xf32>
    %25 = arith.addf %22, %24 : vector<8x128xf32>
    %c0_10 = arith.constant 0 : index
    %c0_11 = arith.constant 0 : index
    %c0_12 = arith.constant 0 : index
    %26 = vector.load %arg5[%c0_10, %c0_11, %c0_12] : memref<1x8x128xf32, #tpu.memory_space<vmem>>, vector<1x8x128xf32>
    %27 = vector.shape_cast %26 : vector<1x8x128xf32> to vector<8x128xf32>
    %28 = vector.shape_cast %25 : vector<8x128xf32> to vector<1x8x128xf32>
    tpu.vector_store %arg5[%c0_10, %c0_11, %c0_12], %28 {strides = array<i32>} : memref<1x8x128xf32, #tpu.memory_space<vmem>>, vector<1x8x128xf32>,
    return
  }
  func.func @transform_0(%arg0: i32, %arg1: i32) -> (i32, i32, i32) {
    %c0_i32 = arith.constant 0 : i32
    %c0_i32_0 = arith.constant 0 : i32
    return %arg0, %c0_i32, %arg1 : i32, i32, i32
  }
  func.func @transform_1(%arg0: i32, %arg1: i32) -> (i32, i32) {
    %c0_i32 = arith.constant 0 : i32
    %c0_i32_0 = arith.constant 0 : i32
    %c0_i32_1 = arith.constant 0 : i32
    return %c0_i32, %c0_i32_0 : i32, i32
  }
  func.func @transform_2(%arg0: i32, %arg1: i32) -> (i32, i32) {
    %c0_i32 = arith.constant 0 : i32
    %c0_i32_0 = arith.constant 0 : i32
    %c0_i32_1 = arith.constant 0 : i32
    return %c0_i32, %c0_i32_0 : i32, i32
  }
  func.func @transform_3(%arg0: i32, %arg1: i32) -> (i32, i32, i32) {
    %c0_i32 = arith.constant 0 : i32
    %c0_i32_0 = arith.constant 0 : i32
    return %arg0, %c0_i32, %arg1 : i32, i32, i32
  }
}

</mosaic_0001>

<bundles_post_ra>
// kernel: tpu_custom_call.1
= control target key start
LH: loop header
LB: loop body
LE: loop exit
PB: predicated region body
PF: predicated region fallthrough
CT: control target
= control target key end

     0   :  { %8 = vsyncpa [#allocation3], 0  ;;  %s598_s0 = inlined_call_operand.vmem [shape: f32[2,8,128], index: 0, kind: input, shape index: {}]   ;;  %s599_s1 = inlined_call_operand.vmem [shape: f32[8,1], index: 1, kind: input, shape index: {}]   ;;  %s600_s2 = inlined_call_operand.vmem [shape: f32[8,1], index: 2, kind: input, shape index: {}]   ;;  %s601_s3 = inlined_call_operand.hbm [shape: f32[2,8,128], index: 3, kind: output, shape index: {}]  }
   0x1   :  { %10 = vsyncpa [#allocation3 + $0x1], 0  ;;  %s480_s12 = smov 0   ;;  %s482_s13 = smov 0  }
   0x2   :  { %s484_s14 = smov 0   ;;  %s486_s15 = smov 0  }
   0x3   :  { %s488_s16 = smov 0   ;;  %s490_s17 = smov 0  }
   0x4 LB: > { %s308_s18 = sadd.s32 4294967295, %s456_s17   ;;  %s309_s19 = sadd.s32 4294967294, %s456_s17   ;;  %s456_s17 = sphi %s490_s17, %s16_s17   ;;  %s452_s16 = sphi %s488_s16, %s608_s16   ;;  %s448_s15 = sphi %s486_s15, %s607_s15   ;;  %s444_s14 = sphi %s484_s14, %s606_s14   ;;  %s440_s13 = sphi %s482_s13, %s605_s13   ;;  %s436_s12 = sphi %s480_s12, %s604_s12  }
   0x5   : > { %s28_s20 = sadd.s32 1, %s452_s16  ;;  %s107_s21 = sadd.s32 1, %s444_s14 }
   0x6   : > { %p30_p0 = scmp.ge.s32.totalorder %s28_s20, 2  ;;  %p117_p1 = scmp.ne.s32.totalorder %s444_s14, %s440_s13 }
   0x7   : > { %p118_p2 = scmp.eq.s32.totalorder %s308_s18, 1  ;;  %p123_p3 = scmp.ne.s32.totalorder %s440_s13, %s436_s12 }
   0x8   : > { %s610_s20 = smov (%p30_p0, %s28_s20), 0  ;;  %p124_p5 = scmp.eq.s32.totalorder %s309_s19, 1 }
   0x9   : > { %p520_p4 = por %p118_p2, %p117_p1  ;;  %s102_s23 = ssub.s32 %s452_s16, %s610_s20 }
   0xa   : > { %p312_p6 = scmp.ge.s32.totalorder %s456_s17, 1  ;;  %p105_p7 = scmp.eq.s32.totalorder %s102_s23, 0 }
   0xb   : > { %p527_p8 = por %p124_p5, %p123_p3  ;;  %p158_p9 = scmp.lt.s32.totalorder %s456_s17, 3 }
   0xc   : > { %s533_s25 = scalar_select %p105_p7, %s444_s14, %s107_s21  }
   0xd   : > { %p159_p10 = pnand %p312_p6, %p158_p9 }
   0xe   : > { %v207_v0 = vld [vmem:[%s599_s1] sm:$0xff] (!%p159_p10)  ;;  %v458_v1 = vmov (!%p159_p10), 0   ;;  %p184_p11 = scmp.lt.s32.totalorder (!%p159_p10), %s448_s15, 1  ;;  %s181_s8 = sand.u32 (!%p159_p10), 1, %s440_s13  }
   0xf   : > { %162 = sbr.rel (%p159_p10) target bundleno = 164 (0xa4), region = 32  ;;  %375 = vset.pattern.permute.xlu0 (!%p159_p10), %v458_v1  ;;  %v214_v2 = vld [vmem:[%s600_s2] sm:$0xff] (!%p159_p10)  ;;  %s313_s9 = sshll.u32 (!%p159_p10), %s181_s8, 3 }
  0x10   : > { %210 = vperm.xlu0 (!%p159_p10), %375, %v207_v0   ;;  %s316_s10 = sshll.u32 (!%p159_p10), %s448_s15, 7  ;;  %s183_s11 = scalar_lea.vmem (!%p159_p10), [#allocation2], %s313_s9 }
  0x11   : > { %s237_s18 = sshll.u32 (!%p159_p10), %s183_s11, 4  ;;  %s551_s23 = scalar_lea.hbm (!%p159_p10), %s601_s3, %s316_s10  ;;  %s553_s18 = int_to_ptr.vmem [resolvable:$true] %s237_s18 }
  0x12   : > { %s223_s26 = scalar_lea.sflag (!%p159_p10), [#allocation3], %s181_s8  ;;  %s378_s27 = scalar_lea.vmem (!%p159_p10), %s553_s18, 128 }
  0x13   : > { %p379_p12 = scmp.ne.s32.totalorder (!%p159_p10), %s553_s18, %s378_s27 }
  0x14   : > { %217 = vperm.xlu0 (!%p159_p10), %375, %v214_v2  }
  0x15   : > { %p380_p13 = pnand (!%p159_p10), %p379_p12, %p520_p4 }
  0x16   : > { %s185_s30 = scalar_select %p184_p11, %s448_s15, 1 }
  0x17   : > { %p381_p0 = pneg %p380_p13  ;;  %s459_s15 = smov [#allocation2]  }
  0x18   : > { %s314_s4 = sshll.u32 %s185_s30, 3  ;;  %s382_s28 = sshll.u32 %s459_s15, 4  ;;  %s383_s28 = int_to_ptr.vmem [resolvable:$false] %s382_s28 }
  0x19   : > { %s190_s7 = scalar_lea.vmem %s598_s0, %s314_s4  ;;  %s384_s29 = scalar_lea.vmem %s383_s28, 256 }
  0x1a   : > { %v191_v3 = vld [vmem:[%s190_s7] sm:$0xff]  ;;  %p385_p1 = scmp.lt.s32.totalorder %s553_s18, %s383_s28  ;;  %p386_p2 = scmp.lt.s32.totalorder %s384_s29, %s378_s27 }
  0x1b   : > { %v192_v4 = vrot.slane %v191_v3, 6 }
  0x1c   : > { %p387_p3 = por %p386_p2, %p385_p1 }
  0x1d   : > { %v193_v5 = vadd.f32 %v192_v4, %v191_v3 }
  0x1e   : > { %p388_p5 = pnand %p387_p3, %p381_p0 }
  0x1f   : > { %v194_v6 = vrot.slane %v193_v5, 4 }
  0x21   : > { %v195_v7 = vadd.f32 %v194_v6, %v193_v5 }
  0x23   : > { %v196_v8 = vmul.f32 0.25, %v195_v7 }
  0x25   : > { %v197_v9 = vsub.f32 %v191_v3, %v196_v8 }
  0x27   : > { %v198_v10 = vmul.f32 %v197_v9, %v197_v9 }
  0x29   : > { %v199_v11 = vrot.slane %v198_v10, 6 }
  0x2b   : > { %v200_v12 = vadd.f32 %v199_v11, %v198_v10 }
  0x2d   : > { %v201_v13 = vrot.slane %v200_v12, 4 }
  0x2f   : > { %v202_v14 = vadd.f32 %v201_v13, %v200_v12 }
  0x31   : > { %v203_v15 = vmul.f32 0.25, %v202_v14 }
  0x33   : > { %v204_v16 = vadd.f32 1e-05, %v203_v15 }
  0x35   : > { %376 = vrsqrt.f32 %v204_v16 }
  0x3f   : > { %v377_v17 = vpop.eup %376 }
  0x40   : > { %v206_v18 = vmul.f32 %v377_v17, %v197_v9 }
  0x8f   : > { %v211_v19 = vpop.permute.xlu0 %210 }
  0x90   : > { %v213_v20 = vmul.f32 %v211_v19, %v206_v18 }
  0x93   : > { %v218_v21 = vpop.permute.xlu0 %217 }
  0x94   : > { %v220_v22 = vadd.f32 %v218_v21, %v213_v20 }
  0x96   : > { %221 = vst [vmem:[%s183_s11] sm:$0xff] %v220_v22 }
  0x97   : > { %391 = shalt.err (!%p388_p5)
}
  0x98   : > { %s392_s30 = scalar_lea.hbm %s551_s23, 128  ;;  %s396_s6 = scalar_lea.hbm %s601_s3, 256 }
  0x99   : > { %p393_p6 = scmp.ne.s32.totalorder %s551_s23, %s392_s30  ;;  %p397_p10 = scmp.lt.u32.totalorder %s551_s23, %s601_s3 }
  0x9a   : > { %p398_p11 = scmp.lt.u32.totalorder %s396_s6, %s392_s30  ;;  %p400_p13 = scmp.lt.u32.totalorder %s392_s30, %s551_s23 }
  0x9b   : > { %p394_p7 = pnand %p393_p6, %p520_p4 }
  0x9c   : > { %p399_p12 = por %p398_p11, %p397_p10 }
  0x9d   : > { %p395_p9 = pneg %p394_p7 }
  0x9e   : > { %p401_p0 = por %p400_p13, %p399_p12 }
  0xa0   : > { %p402_p1 = pnand %p401_p0, %p395_p9 }
  0xa2   : > { %405 = shalt.err (!%p402_p1)
}
  0xa3   : > { %319 = dma.vmem_to_hbm [thread:$0]  (%p520_p4), %s553_s18, 128, %s551_s23, %s223_s26  }
  0xa4 PF: > { %p325_p2 = scmp.ge.s32.totalorder %s456_s17, 2  ;;  %s249_s9 = sand.u32 1, %s436_s12  }
  0xa5   : > { %s250_s10 = scalar_lea.sflag [#allocation3], %s249_s9 }
  0xa6   : > { %p322_p3 = pnand %p325_p2, %p527_p8 }
  0xa8   : > { %431 = dma.done.wait (!%p322_p3), %s250_s10, 128  }
  0xa9   : > { %433 = vsyncadd (!%p322_p3), %s250_s10, 4294967168  ;;  %s16_s17 = sadd.s32 1, %s456_s17   ;;  %s604_s12 = smov %s440_s13 }
  0xaa   : > { %p13_p5 = scmp.ge.s32.totalorder %s16_s17, 4   ;;  %s605_s13 = smov %s444_s14 }
  0xab   : > { %s606_s14 = smov %s533_s25  ;;  %s607_s15 = smov %s452_s16 }
  0xac   : > { %s608_s16 = smov %s610_s20  ;;  %15 = sbr.rel (!%p13_p5) target bundleno = 4 (0x4), region = 67 }
  0xb3   :  { %255 = vsyncpa [#allocation3], 1 }
  0xb4   :  { %257 = vsyncpa [#allocation3 + $0x1], 1 }

</bundles_post_ra>
